<compile_context>
chip_gen: v7x
topology: tpu7x:2x2x1
jax: 0.10.0
libtpu: 0.0.40
codegen_flags: <defaults>
</compile_context>

<pallas_src>
import math
import jax
import jax.numpy as jnp
from jax import lax
from jax.experimental import pallas as pl
from jax.experimental.pallas import tpu as pltpu

# ---------------- model config (small, consistent with the module) -------------
B = 2            # batch
S = 8            # sequence length
D = 32           # d_model
H = 4            # n_heads
DK = D // H      # d_k per head
DFF = 64         # d_ff
EPS = 1e-5       # nn.LayerNorm default eps


def _layernorm(x, gamma, beta):
    mean = jnp.mean(x, axis=-1, keepdims=True)
    var = jnp.mean((x - mean) ** 2, axis=-1, keepdims=True)
    return (x - mean) * lax.rsqrt(var + EPS) * gamma + beta


def transformer_block_kernel(
    x_ref,      # (S, D)        one batch's activations (grid axis = batch)
    wqkv_ref,   # (D, 3*D)      fused Q|K|V weights, Q columns pre-scaled by 1/sqrt(DK)
    wo_ref,     # (D, D)        output projection
    w1_ref,     # (D, DFF)
    w2_ref,     # (DFF, D)
    vec_ref,    # (8, 3*D)      packed biases + LayerNorm gamma/beta rows
    o_ref,      # (S, D)
):
    x = x_ref[...].astype(jnp.float32)                       # (S, D)

    # unpack the small-parameter slab with static row/lane slices
    bqkv = vec_ref[0:1, :]                                    # (1, 3*D)  (Q part pre-scaled)
    bo   = vec_ref[1:2, 0:D]
    g1   = vec_ref[2:3, 0:D]
    b1n  = vec_ref[3:4, 0:D]
    g2   = vec_ref[4:5, 0:D]
    b2n  = vec_ref[5:6, 0:D]
    bf2  = vec_ref[6:7, 0:D]
    bf1  = vec_ref[7:8, 0:DFF]

    # ---- fused QKV projection: one lane-dense MXU matmul, scale folded into Q ----
    # TODO(synk): on v6e/v7x, casting matmul inputs to bf16 (f32 accumulate) would cut MXU
    # passes ~3x but breaks the 1e-4 parity check vs the f32 reference; kept f32 here.
    qkv = jnp.dot(x, wqkv_ref[...], preferred_element_type=jnp.float32) + bqkv   # (S, 3*D)
    q = qkv[:, 0:D].reshape(S, H, DK)
    k = qkv[:, D:2 * D].reshape(S, H, DK)
    v = qkv[:, 2 * D:3 * D].reshape(S, H, DK)

    # ---- per-head attention within this batch (no cross-batch masking needed) ----
    s = jnp.einsum("qhd,khd->hqk", q, k,
                   preferred_element_type=jnp.float32)        # (H, S, S), already scaled
    m = jnp.max(s, axis=-1, keepdims=True)
    e = jnp.exp(s - m)
    denom = jnp.sum(e, axis=-1, keepdims=True)
    r = pl.reciprocal(denom, approx=True)                     # EUP approx reciprocal
    r = r * (2.0 - denom * r)                                 # one Newton step -> f32 accuracy
    p_attn = e * r                                            # softmax weights (H, S, S)

    ctx = jnp.einsum("hqk,khd->qhd", p_attn, v,
                     preferred_element_type=jnp.float32)      # (S, H, DK)

    # output projection: head contraction folded into one (S, D) @ (D, D) matmul
    attn = jnp.dot(ctx.reshape(S, D), wo_ref[...],
                   preferred_element_type=jnp.float32) + bo   # (S, D)

    # ---- residual + LayerNorm 1 ----
    x1 = _layernorm(x + attn, g1, b1n)

    # ---- feed-forward ----
    h1 = jnp.maximum(jnp.dot(x1, w1_ref[...], preferred_element_type=jnp.float32) + bf1, 0.0)
    ff = jnp.dot(h1, w2_ref[...], preferred_element_type=jnp.float32) + bf2

    # ---- residual + LayerNorm 2 ----
    o_ref[...] = _layernorm(x1 + ff, g2, b2n).astype(o_ref.dtype)


def transformer_block(x, packed):
    """x: (B, S, D) float32. packed: dict from pack_params()."""
    Bx, Sx, Dx = x.shape
    x2d = x.reshape(Bx * Sx, Dx)                               # fold batch into rows

    weights = [packed["w_qkv"], packed["w_o"], packed["w1"], packed["w2"], packed["vec"]]
    in_specs = [pl.BlockSpec((Sx, Dx), lambda b: (b, 0))]      # one batch's rows per grid step
    in_specs += [pl.BlockSpec(w.shape, lambda b, nd=w.ndim: (0,) * nd) for w in weights]

    out2d = pl.pallas_call(
        transformer_block_kernel,
        out_shape=jax.ShapeDtypeStruct((Bx * Sx, Dx), x.dtype),
        grid_spec=pltpu.PrefetchScalarGridSpec(
            num_scalar_prefetch=0,
            grid=(Bx,),                                        # batch axis -> parallel (v7x 2 TCs)
            in_specs=in_specs,
            out_specs=pl.BlockSpec((Sx, Dx), lambda b: (b, 0)),
        ),
        compiler_params=pltpu.CompilerParams(dimension_semantics=("parallel",)),
    )(x2d, *weights)
    return out2d.reshape(Bx, Sx, Dx)


def init_params(key):
    """Deterministic init. Linear weights stored as (in, out) so forward is x @ W + b."""
    ks = jax.random.split(key, 8)
    scale_d = 1.0 / math.sqrt(D)
    scale_f = 1.0 / math.sqrt(DFF)
    p = {
        "wq": jax.random.uniform(ks[0], (D, D), jnp.float32, -scale_d, scale_d),
        "bq": jax.random.uniform(ks[1], (1, D), jnp.float32, -scale_d, scale_d),
        "wk": jax.random.uniform(ks[2], (D, D), jnp.float32, -scale_d, scale_d),
        "bk": jax.random.uniform(ks[3], (1, D), jnp.float32, -scale_d, scale_d),
        "wv": jax.random.uniform(ks[4], (D, D), jnp.float32, -scale_d, scale_d),
        "bv": jax.random.uniform(ks[5], (1, D), jnp.float32, -scale_d, scale_d),
        "wo": jax.random.uniform(ks[6], (D, D), jnp.float32, -scale_d, scale_d),
        "bo": jax.random.uniform(ks[7], (1, D), jnp.float32, -scale_d, scale_d),
        "g1": jnp.ones((1, D), jnp.float32),
        "b1n": jnp.zeros((1, D), jnp.float32),
        "g2": jnp.ones((1, D), jnp.float32),
        "b2n": jnp.zeros((1, D), jnp.float32),
    }
    kf = jax.random.split(jax.random.fold_in(key, 123), 4)
    p["w1"] = jax.random.uniform(kf[0], (D, DFF), jnp.float32, -scale_d, scale_d)
    p["bf1"] = jax.random.uniform(kf[1], (1, DFF), jnp.float32, -scale_d, scale_d)
    p["w2"] = jax.random.uniform(kf[2], (DFF, D), jnp.float32, -scale_f, scale_f)
    p["bf2"] = jax.random.uniform(kf[3], (1, D), jnp.float32, -scale_f, scale_f)
    return p


def pack_params(p):
    """Host-side re-packing of the 17 raw tensors into 5 lane-dense kernel operands."""
    inv_sqrt_dk = 1.0 / math.sqrt(DK)
    # fused QKV weight (D, 3*D); 1/sqrt(d_k) folded into the Q columns
    w_qkv = jnp.concatenate([p["wq"] * inv_sqrt_dk, p["wk"], p["wv"]], axis=1)

    # packed small-vector slab (8, 3*D): row0 = fused QKV bias (Q part pre-scaled),
    # rows 1..7 = bo, g1, b1n, g2, b2n, bf2, bf1
    vec = jnp.zeros((8, 3 * D), jnp.float32)
    vec = vec.at[0, :].set(jnp.concatenate(
        [p["bq"][0] * inv_sqrt_dk, p["bk"][0], p["bv"][0]]))
    vec = vec.at[1, :D].set(p["bo"][0])
    vec = vec.at[2, :D].set(p["g1"][0])
    vec = vec.at[3, :D].set(p["b1n"][0])
    vec = vec.at[4, :D].set(p["g2"][0])
    vec = vec.at[5, :D].set(p["b2n"][0])
    vec = vec.at[6, :D].set(p["bf2"][0])
    vec = vec.at[7, :DFF].set(p["bf1"][0])

    return {"w_qkv": w_qkv, "w_o": p["wo"], "w1": p["w1"], "w2": p["w2"], "vec": vec}


def reference_block(x, p):
    """Pure-JAX reference mirroring the PyTorch forward (dropout = identity, mask = None)."""
    def ln(v, g, b):
        m = jnp.mean(v, -1, keepdims=True)
        var = jnp.mean((v - m) ** 2, -1, keepdims=True)
        return (v - m) / jnp.sqrt(var + EPS) * g + b

    q = x @ p["wq"] + p["bq"]
    k = x @ p["wk"] + p["bk"]
    v = x @ p["wv"] + p["bv"]
    Bq = x.shape[0]
    qh = q.reshape(Bq, S, H, DK).transpose(0, 2, 1, 3)
    kh = k.reshape(Bq, S, H, DK).transpose(0, 2, 1, 3)
    vh = v.reshape(Bq, S, H, DK).transpose(0, 2, 1, 3)
    sc = jnp.einsum("bhqd,bhkd->bhqk", qh, kh) / math.sqrt(DK)
    w = jax.nn.softmax(sc, axis=-1)
    ctx = jnp.einsum("bhqk,bhkd->bhqd", w, vh).transpose(0, 2, 1, 3).reshape(Bq, S, D)
    attn = ctx @ p["wo"] + p["bo"]
    x1 = ln(x + attn, p["g1"], p["b1n"])
    ff = jnp.maximum(x1 @ p["w1"] + p["bf1"], 0.0) @ p["w2"] + p["bf2"]
    return ln(x1 + ff, p["g2"], p["b2n"])


if __name__ == "__main__":
    key = jax.random.PRNGKey(0)
    kx, kp = jax.random.split(key)
    x = jax.random.normal(kx, (B, S, D), dtype=jnp.float32)
    params = init_params(kp)
    packed = pack_params(params)

    out = transformer_block(x, packed)
    out = jax.block_until_ready(out)

    ref = reference_block(x, params)
    assert out.shape == (B, S, D)
    assert jnp.allclose(out, ref, atol=1e-4, rtol=1e-4), "mismatch vs JAX reference"
    print("KERNEL_OK")
</pallas_src>

<mosaic_0001>
module attributes {stable_mosaic.version = 11 : i64} {
  func.func @transformer_block_kernel(%arg0: i32, %arg1: memref<8x32xf32, #tpu.memory_space<vmem>>, %arg2: memref<32x96xf32, #tpu.memory_space<vmem>>, %arg3: memref<32x32xf32, #tpu.memory_space<vmem>>, %arg4: memref<32x64xf32, #tpu.memory_space<vmem>>, %arg5: memref<64x32xf32, #tpu.memory_space<vmem>>, %arg6: memref<8x96xf32, #tpu.memory_space<vmem>>, %arg7: memref<8x32xf32, #tpu.memory_space<vmem>>) attributes {dimension_semantics = [#tpu.dimension_semantics<parallel>], iteration_bounds = array<i64: 2>, scalar_prefetch = 0 : i64, scratch_operands = 0 : i64, tpu.core_type = #tpu.core_type<tc>, window_params = [{transform_indices = @transform_0, window_bounds = array<i64: 8, 32>}, {pipeline_mode = #tpu.pipeline_mode<synchronous>, transform_indices = @transform_1, window_bounds = array<i64: 32, 96>}, {pipeline_mode = #tpu.pipeline_mode<synchronous>, transform_indices = @transform_2, window_bounds = array<i64: 32, 32>}, {pipeline_mode = #tpu.pipeline_mode<synchronous>, transform_indices = @transform_3, window_bounds = array<i64: 32, 64>}, {pipeline_mode = #tpu.pipeline_mode<synchronous>, transform_indices = @transform_4, window_bounds = array<i64: 64, 32>}, {pipeline_mode = #tpu.pipeline_mode<synchronous>, transform_indices = @transform_5, window_bounds = array<i64: 8, 96>}, {transform_indices = @transform_6, window_bounds = array<i64: 8, 32>}]} {
    %c0 = arith.constant 0 : index
    %c0_0 = arith.constant 0 : index
    %0 = vector.load %arg1[%c0, %c0_0] : memref<8x32xf32, #tpu.memory_space<vmem>>, vector<8x32xf32>
    %c0_1 = arith.constant 0 : index
    %c0_2 = arith.constant 0 : index
    %1 = vector.load %arg6[%c0_1, %c0_2] : memref<8x96xf32, #tpu.memory_space<vmem>>, vector<1x96xf32>
    %c1 = arith.constant 1 : index
    %c0_3 = arith.constant 0 : index
    %2 = vector.load %arg6[%c1, %c0_3] : memref<8x96xf32, #tpu.memory_space<vmem>>, vector<1x32xf32>
    %c2 = arith.constant 2 : index
    %c0_4 = arith.constant 0 : index
    %3 = vector.load %arg6[%c2, %c0_4] : memref<8x96xf32, #tpu.memory_space<vmem>>, vector<1x32xf32>
    %c3 = arith.constant 3 : index
    %c0_5 = arith.constant 0 : index
    %4 = vector.load %arg6[%c3, %c0_5] : memref<8x96xf32, #tpu.memory_space<vmem>>, vector<1x32xf32>
    %c4 = arith.constant 4 : index
    %c0_6 = arith.constant 0 : index
    %5 = vector.load %arg6[%c4, %c0_6] : memref<8x96xf32, #tpu.memory_space<vmem>>, vector<1x32xf32>
    %c5 = arith.constant 5 : index
    %c0_7 = arith.constant 0 : index
    %6 = vector.load %arg6[%c5, %c0_7] : memref<8x96xf32, #tpu.memory_space<vmem>>, vector<1x32xf32>
    %c6 = arith.constant 6 : index
    %c0_8 = arith.constant 0 : index
    %7 = vector.load %arg6[%c6, %c0_8] : memref<8x96xf32, #tpu.memory_space<vmem>>, vector<1x32xf32>
    %c7 = arith.constant 7 : index
    %c0_9 = arith.constant 0 : index
    %8 = vector.load %arg6[%c7, %c0_9] : memref<8x96xf32, #tpu.memory_space<vmem>>, vector<1x64xf32>
    %c0_10 = arith.constant 0 : index
    %c0_11 = arith.constant 0 : index
    %9 = vector.load %arg2[%c0_10, %c0_11] : memref<32x96xf32, #tpu.memory_space<vmem>>, vector<32x96xf32>
    %cst = arith.constant dense<0.000000e+00> : vector<8x96xf32>
    %10 = tpu.matmul %0, %9, %cst {dimension_numbers = #tpu.dot_dimension_numbers<[1], [0], [0], [1], [0, 0, 1, 1], [], []>} : vector<8x32xf32>, vector<32x96xf32>, vector<8x96xf32> -> vector<8x96xf32>
    %11 = vector.broadcast %1 : vector<1x96xf32> to vector<8x96xf32>
    %12 = arith.addf %10, %11 : vector<8x96xf32>
    %13 = vector.extract_strided_slice %12 {offsets = [0, 0], sizes = [8, 32], strides = [1, 1]} : vector<8x96xf32> to vector<8x32xf32>
    %14 = vector.shape_cast %13 : vector<8x32xf32> to vector<8x4x8xf32>
    %15 = vector.extract_strided_slice %12 {offsets = [0, 32], sizes = [8, 32], strides = [1, 1]} : vector<8x96xf32> to vector<8x32xf32>
    %16 = vector.shape_cast %15 : vector<8x32xf32> to vector<8x4x8xf32>
    %17 = vector.extract_strided_slice %12 {offsets = [0, 64], sizes = [8, 32], strides = [1, 1]} : vector<8x96xf32> to vector<8x32xf32>
    %18 = vector.shape_cast %17 : vector<8x32xf32> to vector<8x4x8xf32>
    "tpu.trace_start"() <{level = 10 : i32, message = "qhd,khd->hqk"}> : () -> ()
    %cst_12 = arith.constant dense<0.000000e+00> : vector<4x8x8xf32>
    %19 = tpu.matmul %14, %16, %cst_12 {dimension_numbers = #tpu.dot_dimension_numbers<[2], [2], [0], [0], [0, 1, 0, 0, 1, 0], [1], [1]>} : vector<8x4x8xf32>, vector<8x4x8xf32>, vector<4x8x8xf32> -> vector<4x8x8xf32>
    "tpu.trace_stop"() : () -> ()
    %cst_13 = arith.constant dense<0xFF800000> : vector<4x8xf32>
    %20 = vector.multi_reduction <maximumf>, %19, %cst_13 [2] : vector<4x8x8xf32> to vector<4x8xf32>
    %21 = vector.shape_cast %20 : vector<4x8xf32> to vector<4x8x1xf32>
    %22 = vector.broadcast %21 : vector<4x8x1xf32> to vector<4x8x8xf32>
    %23 = arith.subf %19, %22 : vector<4x8x8xf32>
    %24 = math.exp %23 : vector<4x8x8xf32>
    %cst_14 = arith.constant dense<0.000000e+00> : vector<4x8xf32>
    %25 = vector.multi_reduction <add>, %24, %cst_14 [2] : vector<4x8x8xf32> to vector<4x8xf32>
    %26 = vector.shape_cast %25 : vector<4x8xf32> to vector<4x8x1xf32>
    %27 = tpu.reciprocal %26 {approx = true} : vector<4x8x1xf32> -> vector<4x8x1xf32>
    %28 = arith.mulf %26, %27 : vector<4x8x1xf32>
    %cst_15 = arith.constant 2.000000e+00 : f32
    %29 = vector.broadcast %cst_15 : f32 to vector<4x8x1xf32>
    %30 = arith.subf %29, %28 : vector<4x8x1xf32>
    %31 = arith.mulf %27, %30 : vector<4x8x1xf32>
    %32 = vector.broadcast %31 : vector<4x8x1xf32> to vector<4x8x8xf32>
    %33 = arith.mulf %24, %32 : vector<4x8x8xf32>
    "tpu.trace_start"() <{level = 10 : i32, message = "hqk,khd->qhd"}> : () -> ()
    %cst_16 = arith.constant dense<0.000000e+00> : vector<4x8x8xf32>
    %34 = tpu.matmul %18, %33, %cst_16 {dimension_numbers = #tpu.dot_dimension_numbers<[0], [2], [2], [1], [0, 1, 0, 2, 1, 1], [1], [0]>} : vector<8x4x8xf32>, vector<4x8x8xf32>, vector<4x8x8xf32> -> vector<4x8x8xf32>
    %35 = tpu.transpose %34, [2, 0, 1] : vector<4x8x8xf32> -> vector<8x4x8xf32>
    "tpu.trace_stop"() : () -> ()
    %36 = vector.shape_cast %35 : vector<8x4x8xf32> to vector<8x32xf32>
    %c0_17 = arith.constant 0 : index
    %c0_18 = arith.constant 0 : index
    %37 = vector.load %arg3[%c0_17, %c0_18] : memref<32x32xf32, #tpu.memory_space<vmem>>, vector<32x32xf32>
    %cst_19 = arith.constant dense<0.000000e+00> : vector<8x32xf32>
    %38 = tpu.matmul %36, %37, %cst_19 {dimension_numbers = #tpu.dot_dimension_numbers<[1], [0], [0], [1], [0, 0, 1, 1], [], []>} : vector<8x32xf32>, vector<32x32xf32>, vector<8x32xf32> -> vector<8x32xf32>
    %39 = vector.broadcast %2 : vector<1x32xf32> to vector<8x32xf32>
    %40 = arith.addf %38, %39 : vector<8x32xf32>
    %41 = arith.addf %0, %40 : vector<8x32xf32>
    %cst_20 = arith.constant dense<0.000000e+00> : vector<8xf32>
    %42 = vector.multi_reduction <add>, %41, %cst_20 [1] : vector<8x32xf32> to vector<8xf32>
    %43 = vector.shape_cast %42 : vector<8xf32> to vector<8x1xf32>
    %cst_21 = arith.constant 3.200000e+01 : f32
    %44 = vector.broadcast %cst_21 : f32 to vector<8x1xf32>
    %45 = arith.divf %43, %44 : vector<8x1xf32>
    %46 = vector.broadcast %45 : vector<8x1xf32> to vector<8x32xf32>
    %47 = arith.subf %41, %46 : vector<8x32xf32>
    %48 = arith.mulf %47, %47 : vector<8x32xf32>
    %cst_22 = arith.constant dense<0.000000e+00> : vector<8xf32>
    %49 = vector.multi_reduction <add>, %48, %cst_22 [1] : vector<8x32xf32> to vector<8xf32>
    %50 = vector.shape_cast %49 : vector<8xf32> to vector<8x1xf32>
    %cst_23 = arith.constant 3.200000e+01 : f32
    %51 = vector.broadcast %cst_23 : f32 to vector<8x1xf32>
    %52 = arith.divf %50, %51 : vector<8x1xf32>
    %53 = vector.broadcast %45 : vector<8x1xf32> to vector<8x32xf32>
    %54 = arith.subf %41, %53 : vector<8x32xf32>
    %cst_24 = arith.constant 9.99999974E-6 : f32
    %55 = vector.broadcast %cst_24 : f32 to vector<8x1xf32>
    %56 = arith.addf %52, %55 : vector<8x1xf32>
    %57 = math.rsqrt %56 : vector<8x1xf32>
    %58 = vector.broadcast %57 : vector<8x1xf32> to vector<8x32xf32>
    %59 = arith.mulf %54, %58 : vector<8x32xf32>
    %60 = vector.broadcast %3 : vector<1x32xf32> to vector<8x32xf32>
    %61 = arith.mulf %59, %60 : vector<8x32xf32>
    %62 = vector.broadcast %4 : vector<1x32xf32> to vector<8x32xf32>
    %63 = arith.addf %61, %62 : vector<8x32xf32>
    %c0_25 = arith.constant 0 : index
    %c0_26 = arith.constant 0 : index
    %64 = vector.load %arg4[%c0_25, %c0_26] : memref<32x64xf32, #tpu.memory_space<vmem>>, vector<32x64xf32>
    %cst_27 = arith.constant dense<0.000000e+00> : vector<8x64xf32>
    %65 = tpu.matmul %63, %64, %cst_27 {dimension_numbers = #tpu.dot_dimension_numbers<[1], [0], [0], [1], [0, 0, 1, 1], [], []>} : vector<8x32xf32>, vector<32x64xf32>, vector<8x64xf32> -> vector<8x64xf32>
    %66 = vector.broadcast %8 : vector<1x64xf32> to vector<8x64xf32>
    %67 = arith.addf %65, %66 : vector<8x64xf32>
    %cst_28 = arith.constant 0.000000e+00 : f32
    %68 = vector.broadcast %cst_28 : f32 to vector<8x64xf32>
    %69 = arith.maximumf %67, %68 : vector<8x64xf32>
    %c0_29 = arith.constant 0 : index
    %c0_30 = arith.constant 0 : index
    %70 = vector.load %arg5[%c0_29, %c0_30] : memref<64x32xf32, #tpu.memory_space<vmem>>, vector<64x32xf32>
    %cst_31 = arith.constant dense<0.000000e+00> : vector<8x32xf32>
    %71 = tpu.matmul %69, %70, %cst_31 {dimension_numbers = #tpu.dot_dimension_numbers<[1], [0], [0], [1], [0, 0, 1, 1], [], []>} : vector<8x64xf32>, vector<64x32xf32>, vector<8x32xf32> -> vector<8x32xf32>
    %72 = vector.broadcast %7 : vector<1x32xf32> to vector<8x32xf32>
    %73 = arith.addf %71, %72 : vector<8x32xf32>
    %74 = arith.addf %63, %73 : vector<8x32xf32>
    %cst_32 = arith.constant dense<0.000000e+00> : vector<8xf32>
    %75 = vector.multi_reduction <add>, %74, %cst_32 [1] : vector<8x32xf32> to vector<8xf32>
    %76 = vector.shape_cast %75 : vector<8xf32> to vector<8x1xf32>
    %cst_33 = arith.constant 3.200000e+01 : f32
    %77 = vector.broadcast %cst_33 : f32 to vector<8x1xf32>
    %78 = arith.divf %76, %77 : vector<8x1xf32>
    %79 = vector.broadcast %78 : vector<8x1xf32> to vector<8x32xf32>
    %80 = arith.subf %74, %79 : vector<8x32xf32>
    %81 = arith.mulf %80, %80 : vector<8x32xf32>
    %cst_34 = arith.constant dense<0.000000e+00> : vector<8xf32>
    %82 = vector.multi_reduction <add>, %81, %cst_34 [1] : vector<8x32xf32> to vector<8xf32>
    %83 = vector.shape_cast %82 : vector<8xf32> to vector<8x1xf32>
    %cst_35 = arith.constant 3.200000e+01 : f32
    %84 = vector.broadcast %cst_35 : f32 to vector<8x1xf32>
    %85 = arith.divf %83, %84 : vector<8x1xf32>
    %86 = vector.broadcast %78 : vector<8x1xf32> to vector<8x32xf32>
    %87 = arith.subf %74, %86 : vector<8x32xf32>
    %cst_36 = arith.constant 9.99999974E-6 : f32
    %88 = vector.broadcast %cst_36 : f32 to vector<8x1xf32>
    %89 = arith.addf %85, %88 : vector<8x1xf32>
    %90 = math.rsqrt %89 : vector<8x1xf32>
    %91 = vector.broadcast %90 : vector<8x1xf32> to vector<8x32xf32>
    %92 = arith.mulf %87, %91 : vector<8x32xf32>
    %93 = vector.broadcast %5 : vector<1x32xf32> to vector<8x32xf32>
    %94 = arith.mulf %92, %93 : vector<8x32xf32>
    %95 = vector.broadcast %6 : vector<1x32xf32> to vector<8x32xf32>
    %96 = arith.addf %94, %95 : vector<8x32xf32>
    %c0_37 = arith.constant 0 : index
    %c0_38 = arith.constant 0 : index
    %97 = vector.load %arg7[%c0_37, %c0_38] : memref<8x32xf32, #tpu.memory_space<vmem>>, vector<8x32xf32>
    tpu.vector_store %arg7[%c0_37, %c0_38], %96 {strides = array<i32>} : memref<8x32xf32, #tpu.memory_space<vmem>>, vector<8x32xf32>,
    return
  }
  func.func @transform_0(%arg0: i32) -> (i32, i32) {
    %c0_i32 = arith.constant 0 : i32
    %c0_i32_0 = arith.constant 0 : i32
    return %arg0, %c0_i32 : i32, i32
  }
  func.func @transform_1(%arg0: i32) -> (i32, i32) {
    %c0_i32 = arith.constant 0 : i32
    %c0_i32_0 = arith.constant 0 : i32
    %c0_i32_1 = arith.constant 0 : i32
    return %c0_i32, %c0_i32_0 : i32, i32
  }
  func.func @transform_2(%arg0: i32) -> (i32, i32) {
    %c0_i32 = arith.constant 0 : i32
    %c0_i32_0 = arith.constant 0 : i32
    %c0_i32_1 = arith.constant 0 : i32
    return %c0_i32, %c0_i32_0 : i32, i32
  }
  func.func @transform_3(%arg0: i32) -> (i32, i32) {
    %c0_i32 = arith.constant 0 : i32
    %c0_i32_0 = arith.constant 0 : i32
    %c0_i32_1 = arith.constant 0 : i32
    return %c0_i32, %c0_i32_0 : i32, i32
  }
  func.func @transform_4(%arg0: i32) -> (i32, i32) {
    %c0_i32 = arith.constant 0 : i32
    %c0_i32_0 = arith.constant 0 : i32
    %c0_i32_1 = arith.constant 0 : i32
    return %c0_i32, %c0_i32_0 : i32, i32
  }
  func.func @transform_5(%arg0: i32) -> (i32, i32) {
    %c0_i32 = arith.constant 0 : i32
    %c0_i32_0 = arith.constant 0 : i32
    %c0_i32_1 = arith.constant 0 : i32
    return %c0_i32, %c0_i32_0 : i32, i32
  }
  func.func @transform_6(%arg0: i32) -> (i32, i32) {
    %c0_i32 = arith.constant 0 : i32
    %c0_i32_0 = arith.constant 0 : i32
    return %arg0, %c0_i32 : i32, i32
  }
}

</mosaic_0001>

<bundles_post_ra>
// kernel: tpu_custom_call.1
= control target key start
LH: loop header
LB: loop body
LE: loop exit
PB: predicated region body
PF: predicated region fallthrough
CT: control target
= control target key end

     0   :  { %11 = vsyncpa [#allocation3], 0  ;;  %s2723_s0 = inlined_call_operand.hbm [shape: f32[16,32], index: 0, kind: input, shape index: {}]   ;;  %s2724_s1 = inlined_call_operand.vmem [shape: f32[32,96], index: 1, kind: input, shape index: {}]   ;;  %s2725_s2 = inlined_call_operand.vmem [shape: f32[32,32], index: 2, kind: input, shape index: {}]   ;;  %s2726_s3 = inlined_call_operand.vmem [shape: f32[32,64], index: 3, kind: input, shape index: {}]   ;;  %s2727_s4 = inlined_call_operand.vmem [shape: f32[64,32], index: 4, kind: input, shape index: {}]   ;;  %s2728_s5 = inlined_call_operand.vmem [shape: f32[8,96], index: 5, kind: input, shape index: {}]   ;;  %s2729_s6 = inlined_call_operand.hbm [shape: f32[16,32], index: 6, kind: output, shape index: {}]  }
   0x1   :  { %13 = vsyncpa [#allocation3 + $0x1], 0 }
   0x2   :  { %14 = vsyncpa [#allocation4], 0 }
   0x3   :  { %16 = vsyncpa [#allocation4 + $0x1], 0  ;;  %s2385_s21 = smov 0   ;;  %s2387_s22 = smov 0  }
   0x4   :  { %s2389_s23 = smov 0   ;;  %s2391_s24 = smov 0  }
   0x5 LB: > { %s2406_s25 = sadd.s32 4294967295, %s2333_s24   ;;  %s1958_s26 = sadd.s32 4294967294, %s2333_s24   ;;  %s2333_s24 = sphi %s2391_s24, %s2744_s24   ;;  %s2329_s23 = sphi %s2389_s23, %s2743_s23   ;;  %s2325_s22 = sphi %s2387_s22, %s2742_s22   ;;  %s2321_s21 = sphi %s2385_s21, %s2741_s21  }
   0x6   : > { %s2410_s27 = sadd.s32 1, %s2333_s24   ;;  %s29_s28 = sadd.s32 1, %s2329_s23 }
   0x7   : > { %s26_s29 = ssub.s32 %s2333_s24, %s2410_s27  ;;  %p36_p0 = scmp.ne.s32.totalorder %s2329_s23, %s2325_s22 }
   0x8   : > { %p27_p1 = scmp.eq.s32.totalorder %s26_s29, 0  ;;  %p37_p2 = scmp.eq.s32.totalorder %s2333_s24, 0 }
   0x9   : > { %p42_p3 = scmp.ne.s32.totalorder %s2325_s22, %s2321_s21  ;;  %p43_p4 = scmp.eq.s32.totalorder %s2406_s25, 0 }
   0xa   : > { %s2422_s30 = scalar_select %p27_p1, %s2329_s23, %s29_s28  }
   0xb   : > { %p2424_p5 = por %p37_p2, %p36_p0  ;;  %p2428_p6 = por %p43_p4, %p42_p3 }
   0xc   : > { %p171_p7 = scmp.eq.s32.totalorder %s2406_s25, 1  ;;  %p177_p8 = scmp.eq.s32.totalorder %s1958_s26, 1 }
   0xd   : > { %p2170_p10 = scmp.lt.s32.totalorder %s2333_s24, 2  ;;  %s212_s11 = sand.u32 1, %s2329_s23  }
   0xe   : > { %p2435_p11 = por %p171_p7, %p36_p0  ;;  %p2439_p12 = por %p177_p8, %p42_p3 }
   0xf   : > { %s1962_s12 = sshll.u32 %s2333_s24, 7  ;;  %s1961_s13 = sshll.u32 %s212_s11, 3 }
  0x10   : > { %s2733_s9 = scalar_select %p2435_p11, 1, 0 }
  0x11   : > { %s2734_s10 = scalar_select %p2439_p12, 1, 0 }
  0x12   : > { %s2448_s16 = scalar_lea.hbm %s2723_s0, %s1962_s12  ;;  %s216_s17 = scalar_lea.vmem [#allocation2], %s1961_s13 }
  0x13   : > { %s223_s18 = sshll.u32 %s216_s17, 4  ;;  %p2452_p13 = pnand %p2170_p10, %p2424_p5  ;;  %s2456_s18 = int_to_ptr.vmem [resolvable:$true] %s223_s18 }
  0x14   : > { %s213_s20 = scalar_lea.sflag [#allocation3], %s212_s11  ;;  %s2237_s26 = scalar_lea.hbm %s2448_s16, 128 }
  0x15   : > { %p2238_p2 = scmp.ne.s32.totalorder %s2448_s16, %s2237_s26  ;;  %p2239_p3 = pneg %p2452_p13 }
  0x16   : > { %s2242_s7 = scalar_lea.hbm %s2723_s0, 256  ;;  %p2243_p5 = scmp.lt.u32.totalorder %s2448_s16, %s2723_s0 }
  0x17   : > { %p2240_p4 = pnand %p2239_p3, %p2238_p2  ;;  %p2244_p8 = scmp.lt.u32.totalorder %s2242_s7, %s2237_s26 }
  0x18   : > { %p2246_p9 = scmp.lt.u32.totalorder %s2237_s26, %s2448_s16 }
  0x19   : > { %p2241_p7 = pneg %p2240_p4  ;;  %p2245_p10 = por %p2244_p8, %p2243_p5 }
  0x1b   : > { %p2247_p0 = por %p2246_p9, %p2245_p10 }
  0x1d   : > { %p2248_p1 = pnand %p2247_p0, %p2241_p7 }
  0x1f   : > { %2251 = shalt.err (!%p2248_p1)
}
  0x20   : > { %s2252_s11 = scalar_lea.vmem %s2456_s18, 128  ;;  %s2335_s14 = smov [#allocation2]  }
  0x21   : > { %p2253_p2 = scmp.ne.s32.totalorder %s2456_s18, %s2252_s11  ;;  %s2257_s15 = sshll.u32 %s2335_s14, 4  ;;  %s2258_s15 = int_to_ptr.vmem [resolvable:$false] %s2257_s15 }
  0x22   : > { %s2259_s17 = scalar_lea.vmem %s2258_s15, 256  ;;  %p2260_p11 = scmp.lt.s32.totalorder %s2456_s18, %s2258_s15 }
  0x23   : > { %p2255_p4 = pnand %p2253_p2, %p2239_p3  ;;  %p2261_p5 = scmp.lt.s32.totalorder %s2259_s17, %s2252_s11 }
  0x25   : > { %p2256_p12 = pneg %p2255_p4  ;;  %p2262_p8 = por %p2261_p5, %p2260_p11 }
  0x27   : > { %p2263_p9 = pnand %p2262_p8, %p2256_p12 }
  0x29   : > { %2266 = shalt.err (!%p2263_p9)
}
  0x2a   : > { %2165 = dma.hbm_to_vmem [thread:$0]  (!%p2452_p13), %s2448_s16, 128, %s2456_s18, %s213_s20  }
  0x2b   : > { %p2736_p0 = scmp.lt.s32.totalorder %s2333_s24, 3  ;;  %p2737_p1 = scmp.ge.s32.totalorder %s2333_s24, 1 }
  0x2d   : > { %p229_p3 = pnand %p2737_p1, %p2736_p0 }
  0x2e   : > { %s2490_s26 = sand.u32 (!%p229_p3), 1, %s2325_s22  }
  0x2f   : > { %232 = sbr.rel (%p229_p3) target bundleno = 3064 (0xbf8), region = 44  ;;  %s1964_s28 = sshll.u32 (!%p229_p3), %s2490_s26, 3 }
  0x30   : > { %s235_s29 = scalar_lea.sflag (!%p229_p3), [#allocation3], %s2490_s26  ;;  %s238_s19 = scalar_lea.vmem (!%p229_p3), [#allocation2], %s1964_s28 }
  0x36   : > { %2312 = dma.done.wait (%p2428_p6), %s235_s29, 128  }
  0x37   : > { %2314 = vsyncadd (%p2428_p6), %s235_s29, 4294967168  ;;  %v2336_v0 = vmov 0.0|0.0   ;;  %vm2337_vm0 = vmmov 0   ;;  %v2338_v1 = vmov 0.0   ;;  %v276_v2 = vld [vmem:[%s2724_s1] sm:$0xff]  ;;  %v277_v3 = vld [vmem:[%s2724_s1 + $0x8] sm:$0xff] }
  0x38   : > { %2128 = vmatprep.subr.bf16.mxu0 %v2336_v0  ;;  %2044 = vmatprep.mubr.msk.f32.mxu0 %vm2337_vm0, %v2338_v1  ;;  %v278_v4 = vld [vmem:[%s2724_s1 + $0x10] sm:$0xff]  ;;  %v2129_v5 = vpack.c.bf16 %v277_v3, %v276_v2  ;;  %v279_v6 = vld [vmem:[%s2724_s1 + $0x18] sm:$0xff]  ;;  %v2519_v8 = vld [vmem:[%s238_s19] sm:$0xff]  ;;  %vm284_vm1 = vcmask 261120   ;;  %s2339_s17 = smov 104   ;;  %s2340_s29 = smov 120  }
  0x39   : > { %2047 = vmatprep.subr.mxu1 %v2338_v1  ;;  %2049 = vmatprep.mubr.msk.f32.mxu1 %vm2337_vm0, %v2338_v1  ;;  %v2132_v7 = vpack.c.bf16 %v279_v6, %v278_v4  ;;  %v1966_v9 = vld [vmem:[%s2728_s5] ss:$0 sm:$0xff]  ;;  %s2341_s19 = smov 96   ;;  %s2342_s16 = smov 112   ;;  %vm505_vm2 = vcmask 64512   ;;  %vm1571_vm3 = vcmask 130048  }
  0x3a   : > { %2130 = vmatpush3.bf16.msra.mxu0 %v2129_v5  ;;  %s2343_s18 = smov 64   ;;  %vm1573_vm4 = vcmask 195584   ;;  %vm1775_vm5 = vcmask 523264   ;;  %s1875_s12 = scalar_lea.sflag [#allocation4], %s2490_s26 }
  0x3b   : > { %2131 = vmatprep.subr.bf16.mxu0 %v2336_v0  ;;  %p2738_p11 = scmp.ne.s32.totalorder %s2733_s9, 0 }
  0x3e   : > { %2133 = vmatpush3.bf16.msra.mxu0 %v2132_v7 }
  0x3f   : > { %2062 = vmatprep.subr.mxu0 %v2338_v1 }
  0x41   : > { %2045 = vmatmul.mubr.msk.f32.vlgmr.msra.gmra.mrb[0].mxu0 %vm284_vm1, %v2519_v8 }
  0x42   : > { %2064 = vmatprep.mubr.msk.f32.mxu0 %vm2337_vm0, %v2338_v1 }
 0x114   : > { %v354_v10 = vpop.f32.mrb[0].mxu0 }
 0x115   : > { %v355_v11 = vadd.f32 %v1966_v9, %v354_v10  ;;  %v2046_v12 = vpop.f32.mrb[1].mxu0 }
 0x117   : > { %363 = vrot.lane.b32.xlu1 %v355_v11, %s2339_s17  ;;  %359 = vrot.lane.b32.xlu0 %v355_v11, %s2340_s29  ;;  %s2346_s17 = smov 16   ;;  %s2347_s29 = smov 8  }
 0x11b   : > { %365 = vrot.lane.b32.xlu1 %v355_v11, %s2341_s19  ;;  %361 = vrot.lane.b32.xlu0 %v355_v11, %s2342_s16  ;;  %s266_s16 = scalar_lea.vmem [#allocation5], %s1964_s28 }
 0x189   : > { %v360_v13 = vpop.permute.xlu0 %359  ;;  %v2529_v14 = vpop.permute.xlu1 %363 }
 0x18a   : > { %367 = vrot.lane.b32.xlu0 %v360_v13, %s2341_s19 }
 0x18d   : > { %v2531_v15 = vpop.permute.xlu0 %361  ;;  %v366_v16 = vpop.permute.xlu1 %365 }
 0x18e   : > { %371 = vrot.lane.b32.xlu0 %v2529_v14, %s2341_s19  ;;  %369 = vrot.lane.b32.xlu1 %v2531_v15, %s2341_s19  ;;  %s2348_s19 = smov 24  }
 0x1b7   : > { %377 = vxpose.xlu1.b32.start.end [1/1] (short) (narrow) %v366_v16, 8 }
 0x1fc   : > { %v368_v17 = vpop.permute.xlu0 %367 }
 0x1fd   : > { %409 = vxpose.xlu0.b32.start.end [1/1] (short) (narrow) %v368_v17, 8 }
 0x200   : > { %v370_v18 = vpop.permute.xlu1 %369  ;;  %v372_v19 = vpop.permute.xlu0 %371 }
 0x201   : > { %441 = vxpose.xlu0.b32.start.end [1/1] (short) (narrow) %v370_v18, 8 }
 0x205   : > { %473 = vxpose.xlu0.b32.start.end [1/1] (short) (narrow) %v372_v19, 8 }
 0x237   : > { %v393_v20 = vpop.trf.xlu1 }
 0x238   : > { %2048 = vmatpush3.msra.mxu1 %v393_v20 }
 0x239   : > { %2050 = vmatmul.mubr.msk.f32.vlgmr.msra.gmra.mrb[0].mxu1 %vm505_vm2, %v355_v11  ;;  %2052 = vmatprep.subr.mxu1 %v2338_v1 }
 0x23a   : > { %2054 = vmatprep.mubr.msk.f32.mxu1 %vm2337_vm0, %v2338_v1 }
 0x27d   : > { %v425_v21 = vpop.trf.xlu0 }
 0x27e   : > { %2053 = vmatpush3.msra.mxu1 %v425_v21 }
 0x27f   : > { %2055 = vmatmul.mubr.msk.f32.vlgmr.msra.gmra.mrb[2].mxu1 %vm505_vm2, %v360_v13  ;;  %2057 = vmatprep.subr.mxu1 %v2338_v1 }
 0x280   : > { %2059 = vmatprep.mubr.msk.f32.mxu1 %vm2337_vm0, %v2338_v1 }
 0x281   : > { %v457_v22 = vpop.trf.xlu0 }
 0x282   : > { %2058 = vmatpush3.msra.mxu1 %v457_v22 }
 0x283   : > { %2060 = vmatmul.mubr.msk.f32.vlgmr.msra.gmra.mrb[4].mxu1 %vm505_vm2, %v2531_v15  ;;  %2067 = vmatprep.subr.mxu1 %v2338_v1 }
 0x284   : > { %2069 = vmatprep.mubr.msk.f32.mxu1 %vm2337_vm0, %v2338_v1 }
 0x285   : > { %v489_v23 = vpop.trf.xlu0 }
 0x286   : > { %2063 = vmatpush3.msra.mxu0 %v489_v23 }
 0x287   : > { %2065 = vmatmul.mubr.msk.f32.vlgmr.msra.gmra.mrb[2].mxu0 %vm505_vm2, %v2529_v14  ;;  %2072 = vmatprep.subr.mxu0 %v2338_v1 }
 0x288   : > { %2074 = vmatprep.mubr.msk.f32.mxu0 %vm2337_vm0, %v2338_v1 }
 0x30c   : > { %v574_v24 = vpop.f32.mrb[0].mxu1 }
 0x30d   : > { %v2051_v25 = vpop.f32.mrb[1].mxu1  ;;  %v794_v26 = vsel %vm505_vm2, %v574_v24, -inf }
 0x30e   : > { %795 = vmax.xlane.f32.xlu1 %v794_v26 }
 0x352   : > { %v646_v27 = vpop.f32.mrb[2].mxu1 }
 0x353   : > { %v2056_v28 = vpop.f32.mrb[3].mxu1  ;;  %v797_v29 = vsel %vm505_vm2, %v646_v27, -inf }
 0x354   : > { %798 = vmax.xlane.f32.xlu0 %v797_v29 }
 0x356   : > { %v718_v30 = vpop.f32.mrb[4].mxu1 }
 0x357   : > { %v2061_v31 = vpop.f32.mrb[5].mxu1  ;;  %v800_v35 = vsel %vm505_vm2, %v718_v30, -inf }
 0x35a   : > { %v790_v32 = vpop.f32.mrb[2].mxu0 }
 0x35b   : > { %v2066_v33 = vpop.f32.mrb[3].mxu0  ;;  %v803_v34 = vsel %vm505_vm2, %v790_v32, -inf }
 0x35c   : > { %804 = vmax.xlane.f32.xlu1 %v803_v34 }
 0x360   : > { %801 = vmax.xlane.f32.xlu1 %v800_v35  ;;  %v1575_v35 = vld [vmem:[%s2725_s2] sm:$0xff] }
 0x36a   : > { %850 = vrot.lane.b32.xlu0 %v355_v11, %s2343_s18 }
 0x371   : > { %852 = vrot.lane.b32.xlu1 %v360_v13, %s2343_s18 }
 0x39b   : > { %v796_v36 = vpop.xlane.xlu1 %795 }
 0x39c   : > { %v806_v37 = vsub.f32 %v574_v24, %v796_v36  ;;  %v1576_v36 = vld [vmem:[%s2725_s2 + $0x8] sm:$0xff] }
 0x39e   : > { %v810_v38 = vmul.f32 1.442695, %v806_v37  ;;  %v2135_v37 = vpack.c.bf16 %v1576_v36, %v1575_v35  ;;  %v1982_v36 = vld [vmem:[%s2728_s5 + $0x1] ss:$0 sm:$0xff] }
 0x3a0   : > { %2217 = vpow2.f32 %v810_v38 }
 0x3aa   : > { %v2218_v39 = vpop.eup %2217 }
 0x3ab   : > { %v818_v40 = vsel %vm505_vm2, %v2218_v39, 0.0 }
 0x3ac   : > { %819 = vadd.xlane.f32.xlu0 %v818_v40 }
 0x3e1   : > { %v799_v41 = vpop.xlane.xlu0 %798 }
 0x3e2   : > { %v807_v42 = vsub.f32 %v646_v27, %v799_v41  ;;  %v1427_v41 = vlaneseq }
 0x3e4   : > { %v812_v43 = vmul.f32 1.442695, %v807_v42 }
 0x3e5   : > { %v851_v57 = vpop.permute.xlu0 %850 }
 0x3e6   : > { %2219 = vpow2.f32 %v812_v43  ;;  %v2345_v43 = vmov 1934713408  }
 0x3e9   : > { %v805_v44 = vpop.xlane.xlu1 %804 }
 0x3ea   : > { %v809_v45 = vsub.f32 %v790_v32, %v805_v44  ;;  %v1457_v44 = vunpack.c.l.s4 %v2345_v43 }
 0x3ec   : > { %v816_v46 = vmul.f32 1.442695, %v809_v45 }
 0x3ed   : > { %v802_v47 = vpop.xlane.xlu1 %801 }
 0x3ee   : > { %2221 = vpow2.f32 %v816_v46  ;;  %v808_v48 = vsub.f32 %v718_v30, %v802_v47  ;;  %v1428_v46 = vshrl.u32 %v1427_v41, 7 }
 0x3f0   : > { %v2220_v49 = vpop.eup %2219  ;;  %v814_v50 = vmul.f32 1.442695, %v808_v48  ;;  %v1458_v48 = vunpack.c.0.s8 %v1457_v44 }
 0x3f1   : > { %v821_v51 = vsel %vm505_vm2, %v2220_v49, 0.0  ;;  %v853_v56 = vpop.permute.xlu1 %852 }
 0x3f2   : > { %2223 = vpow2.f32 %v814_v50  ;;  %822 = vadd.xlane.f32.xlu1 %v821_v51 }
 0x3f8   : > { %v2222_v52 = vpop.eup %2221 }
 0x3f9   : > { %v827_v53 = vsel %vm505_vm2, %v2222_v52, 0.0 }
 0x3fa   : > { %828 = vadd.xlane.f32.xlu0 %v827_v53 }
 0x3fc   : > { %v2224_v54 = vpop.eup %2223 }
 0x3fd   : > { %v824_v55 = vsel %vm505_vm2, %v2224_v54, 0.0 }
 0x3fe   : > { %825 = vadd.xlane.f32.xlu1 %v824_v55  ;;  %v1461_v55 = vsub.s32 %v1458_v48, %v1428_v46 }
 0x40f   : > { %856 = vrot.lane.b32.xlu1 %v2529_v14, %s2343_s18 }
 0x410   : > { %854 = vrot.lane.b32.xlu0 %v2531_v15, %s2343_s18  ;;  %s1888_s18 = sshll.u32 %s266_s16, 4  ;;  %s2680_s18 = int_to_ptr.vmem [resolvable:$true] %s1888_s18 }
 0x411   : > { %s2267_s13 = scalar_lea.vmem %s2680_s18, 128 }
 0x412   : > { %p2268_p6 = scmp.ne.s32.totalorder %s2680_s18, %s2267_s13 }
 0x414   : > { %p2269_p12 = pnand %p2268_p6, %p2738_p11 }
 0x416   : > { %p2270_p13 = pneg %p2269_p12 }
 0x42e   : > { %894 = vxpose.xlu0.b32.start.end [1/1] (short) (narrow) %v853_v56, 8 }
 0x438   : > { %862 = vxpose.xlu1.b32.start.end [1/1] (short) (narrow) %v851_v57, 8 }
 0x439   : > { %v820_v58 = vpop.xlane.xlu0 %819 }
 0x43a   : > { %2225 = vrcp.f32 %v820_v58 }
 0x444   : > { %v2226_v59 = vpop.eup %2225 }
 0x445   : > { %v834_v60 = vmul.f32 %v2226_v59, %v820_v58 }
 0x447   : > { %v838_v61 = vsub.f32 2.0, %v834_v60 }
 0x449   : > { %v842_v62 = vmul.f32 %v2226_v59, %v838_v61 }
 0x44b   : > { %v846_v63 = vmul.f32 %v2218_v39, %v842_v62  ;;  %v2344_v39 = vmov 1983009808  }
 0x44c   : > { %v1425_v40 = vunpack.c.l.s4 %v2344_v39 }
 0x44d   : > { %2068 = vmatpush3.xpose.msk.msra.mxu1 %vm505_vm2, %v846_v63 }
 0x44e   : > { %2077 = vmatprep.subr.mxu1 %v2338_v1  ;;  %v1426_v45 = vunpack.c.0.s8 %v1425_v40 }
 0x47f   : > { %v823_v2 = vpop.xlane.xlu1 %822 }
 0x480   : > { %2227 = vrcp.f32 %v823_v2 }
 0x487   : > { %v829_v3 = vpop.xlane.xlu0 %828 }
 0x488   : > { %2229 = vrcp.f32 %v829_v3 }
 0x48a   : > { %v2228_v4 = vpop.eup %2227 }
 0x48b   : > { %v835_v5 = vmul.f32 %v2228_v4, %v823_v2  ;;  %v855_v6 = vpop.permute.xlu0 %854  ;;  %v826_v7 = vpop.xlane.xlu1 %825  ;;  %v1577_v2 = vld [vmem:[%s2725_s2 + $0x10] sm:$0xff] }
 0x48c   : > { %926 = vxpose.xlu0.b32.start.end [1/1] (short) (narrow) %v855_v6, 8  ;;  %2231 = vrcp.f32 %v826_v7 }
 0x48d   : > { %v839_v9 = vsub.f32 2.0, %v835_v5 }
 0x48f   : > { %v843_v10 = vmul.f32 %v2228_v4, %v839_v9  ;;  %v857_v11 = vpop.permute.xlu1 %856 }
 0x490   : > { %958 = vxpose.xlu0.b32.start.end [1/1] (short) (narrow) %v857_v11, 8 }
 0x491   : > { %v847_v12 = vmul.f32 %v2220_v49, %v843_v10  ;;  %v1429_v49 = vsub.s32 %v1426_v45, %v1428_v46 }
 0x492   : > { %v2230_v13 = vpop.eup %2229 }
 0x493   : > { %2073 = vmatpush3.xpose.msk.msra.mxu0 %vm505_vm2, %v847_v12  ;;  %v837_v14 = vmul.f32 %v2230_v13, %v829_v3  ;;  %v1578_v3 = vld [vmem:[%s2725_s2 + $0x18] sm:$0xff] }
 0x494   : > { %2082 = vmatprep.subr.mxu0 %v2338_v1  ;;  %v2138_v9 = vpack.c.bf16 %v1578_v3, %v1577_v2  ;;  %v1984_v2 = vld [vmem:[%s2728_s5 + $0x2] ss:$0 sm:$0xff] }
 0x495   : > { %v841_v15 = vsub.f32 2.0, %v837_v14 }
 0x496   : > { %v2232_v16 = vpop.eup %2231 }
 0x497   : > { %v845_v17 = vmul.f32 %v2230_v13, %v841_v15  ;;  %v836_v18 = vmul.f32 %v2232_v16, %v826_v7 }
 0x499   : > { %v849_v19 = vmul.f32 %v2222_v52, %v845_v17  ;;  %v840_v21 = vsub.f32 2.0, %v836_v18 }
 0x49b   : > { %v844_v22 = vmul.f32 %v2232_v16, %v840_v21 }
 0x49d   : > { %v848_v23 = vmul.f32 %v2224_v54, %v844_v22 }
 0x4ae   : > { %v910_v20 = vpop.trf.xlu0 }
 0x4af   : > { %2075 = vmatmul.mubr.msk.f32.vlgmr.msra.gmra.mrb[4].mxu0 %vm505_vm2, %v910_v20 }
 0x4b0   : > { %2083 = vmatpush3.xpose.msk.msra.mxu0 %vm505_vm2, %v849_v19  ;;  %2084 = vmatprep.mubr.msk.f32.mxu0 %vm2337_vm0, %v2338_v1 }
 0x4b1   : > { %2134 = vmatprep.subr.bf16.mxu0 %v2336_v0 }
 0x4b8   : > { %v878_v24 = vpop.trf.xlu1 }
 0x4b9   : > { %2070 = vmatmul.mubr.msk.f32.vlgmr.msra.gmra.mrb[6].mxu1 %vm505_vm2, %v878_v24 }
 0x4ba   : > { %2078 = vmatpush3.xpose.msk.msra.mxu1 %vm505_vm2, %v848_v23  ;;  %2079 = vmatprep.mubr.msk.f32.mxu1 %vm2337_vm0, %v2338_v1 }
 0x4bb   : > { %2146 = vmatprep.subr.bf16.mxu1 %v2336_v0 }
 0x50c   : > { %v942_v25 = vpop.trf.xlu0 }
 0x50d   : > { %2080 = vmatmul.mubr.msk.f32.vlgmr.msra.gmra.mrb[8].mxu1 %vm505_vm2, %v942_v25 }
 0x50e   : > { %2125 = vmatprep.mubr.msk.f32.mxu1 %vm2337_vm0, %v2338_v1 }
 0x510   : > { %v974_v26 = vpop.trf.xlu0 }
 0x511   : > { %2085 = vmatmul.mubr.msk.f32.vlgmr.msra.gmra.mrb[6].mxu0 %vm505_vm2, %v974_v26 }
 0x512   : > { %2095 = vmatprep.mubr.msk.f32.mxu0 %vm2337_vm0, %v2338_v1  ;;  %2136 = vmatpush3.bf16.msra.mxu0 %v2135_v37 }
 0x513   : > { %2137 = vmatprep.subr.bf16.mxu0 %v2336_v0 }
 0x516   : > { %2139 = vmatpush3.bf16.msra.mxu0 %v2138_v9 }
 0x517   : > { %2140 = vmatprep.subr.bf16.mxu0 %v2336_v0 }
 0x582   : > { %v1138_v27 = vpop.f32.mrb[4].mxu0 }
 0x583   : > { %v2076_v28 = vpop.f32.mrb[5].mxu0  ;;  %1326 = vxpose.xlu0.b32.start.end [1/1] (short) (narrow) %v1138_v27, 8 }
 0x58c   : > { %v1062_v29 = vpop.f32.mrb[6].mxu1 }
 0x58d   : > { %1294 = vxpose.xlu1.b32.start.end [1/1] (short) (narrow) %v1062_v29, 8  ;;  %v2071_v30 = vpop.f32.mrb[7].mxu1 }
 0x5e0   : > { %v1214_v31 = vpop.f32.mrb[8].mxu1 }
 0x5e1   : > { %v2081_v32 = vpop.f32.mrb[9].mxu1  ;;  %1358 = vxpose.xlu1.b32.start.end [1/1] (short) (narrow) %v1214_v31, 8 }
 0x5e4   : > { %v1290_v33 = vpop.f32.mrb[6].mxu0 }
 0x5e5   : > { %1390 = vxpose.xlu0.b32.start.end [1/1] (short) (narrow) %v1290_v33, 8  ;;  %v2086_v34 = vpop.f32.mrb[7].mxu0 }
 0x603   : > { %v1342_v42 = vpop.trf.xlu0 }
 0x60d   : > { %v1310_v38 = vpop.trf.xlu1 }
 0x661   : > { %v1374_v47 = vpop.trf.xlu1 }
 0x662   : > { %v1422_v50 = vcombine.low %v1310_v38, %v1374_v47  ;;  %v1423_v51 = vcombine.high %v1310_v38, %v1374_v47  ;;  %v1682_v47 = vld [vmem:[%s2726_s3 + $0x8] sm:$0xff] }
 0x664   : > { %v1430_v56 = vrot.slane %v1422_v50, %v1429_v49  ;;  %v1437_v57 = vrot.slane %v1423_v51, %v1429_v49  ;;  %v1763_v51 = vld [vmem:[%s2727_s4] sm:$0xff] }
 0x665   : > { %v1406_v52 = vpop.trf.xlu0 }
 0x666   : > { %v1438_v53 = vcombine.low %v1342_v42, %v1406_v52  ;;  %v1439_v54 = vcombine.high %v1342_v42, %v1406_v52  ;;  %v1764_v52 = vld [vmem:[%s2727_s4 + $0x8] sm:$0xff] }
 0x668   : > { %v1446_v58 = vrot.slane %v1438_v53, %v1429_v49  ;;  %v1453_v59 = vrot.slane %v1439_v54, %v1429_v49  ;;  %v1765_v53 = vld [vmem:[%s2727_s4 + $0x10] sm:$0xff]  ;;  %v2147_v54 = vpack.c.bf16 %v1764_v52, %v1763_v51 }
 0x66a   : > { %v1454_v60 = vcombine.low %v1430_v56, %v1446_v58  ;;  %v1455_v61 = vcombine.high %v1430_v56, %v1446_v58  ;;  %v1470_v62 = vcombine.low %v1437_v57, %v1453_v59  ;;  %v1471_v63 = vcombine.high %v1437_v57, %v1453_v59  ;;  %2148 = vmatpush3.bf16.msra.mxu1 %v2147_v54  ;;  %v1767_v57 = vld [vmem:[%s2727_s4 + $0x20] sm:$0xff]  ;;  %v1768_v58 = vld [vmem:[%s2727_s4 + $0x28] sm:$0xff] }
 0x66b   : > { %2149 = vmatprep.subr.bf16.mxu1 %v2336_v0  ;;  %v2153_v59 = vpack.c.bf16 %v1768_v58, %v1767_v57 }
 0x66c   : > { %v1462_v4 = vrot.slane %v1454_v60, %v1461_v55  ;;  %v1469_v5 = vrot.slane %v1455_v61, %v1461_v55  ;;  %v1478_v6 = vrot.slane %v1470_v62, %v1461_v55  ;;  %v1485_v7 = vrot.slane %v1471_v63, %v1461_v55 }
 0x66e   : > { %v1490_v10 = vcombine.low %v1462_v4, %v1469_v5  ;;  %v1980_v11 = vcombine.high %v1462_v4, %v1469_v5  ;;  %v1506_v12 = vcombine.low %v1478_v6, %v1485_v7  ;;  %v1981_v13 = vcombine.high %v1478_v6, %v1485_v7  ;;  %v1985_v4 = vld [vmem:[%s2728_s5 + $0x3] ss:$0 sm:$0xff]  ;;  %v1770_v7 = vld [vmem:[%s2727_s4 + $0x38] sm:$0xff] }
 0x670   : > { %v1497_v14 = vrot.slane %v1490_v10, %v1429_v49  ;;  %v1505_v15 = vrot.slane %v1980_v11, %v1429_v49  ;;  %v1513_v16 = vrot.slane %v1506_v12, %v1429_v49  ;;  %v1521_v17 = vrot.slane %v1981_v13, %v1429_v49  ;;  %v1684_v49 = vld [vmem:[%s2726_s3 + $0x18] sm:$0xff]  ;;  %v1986_v10 = vld [vmem:[%s2728_s5 + $0x7] ss:$0 sm:$0xff] }
 0x672   : > { %v1523_v18 = vcombine.high %v1497_v14, %v1505_v15  ;;  %v1539_v19 = vcombine.high %v1513_v16, %v1521_v17  ;;  %v1522_v20 = vcombine.low %v1497_v14, %v1505_v15  ;;  %v1538_v21 = vcombine.low %v1513_v16, %v1521_v17  ;;  %v1988_v15 = vld [vmem:[%s2728_s5 + $0x6] ss:$0 sm:$0xff] }
 0x674   : > { %v1537_v22 = vrot.slane %v1523_v18, %v1461_v55  ;;  %v1553_v23 = vrot.slane %v1539_v19, %v1461_v55  ;;  %v1530_v24 = vrot.slane %v1522_v20, %v1461_v55  ;;  %v1546_v25 = vrot.slane %v1538_v21, %v1461_v55  ;;  %v1766_v55 = vld [vmem:[%s2727_s4 + $0x18] sm:$0xff] }
 0x675   : > { %v2150_v56 = vpack.c.bf16 %v1766_v55, %v1765_v53 }
 0x676   : > { %v1556_v26 = vcombine.low %v1537_v22, %v1553_v23  ;;  %v1555_v27 = vcombine.high %v1530_v24, %v1546_v25  ;;  %v1554_v28 = vcombine.low %v1530_v24, %v1546_v25  ;;  %v1557_v29 = vcombine.high %v1537_v22, %v1553_v23 }
 0x677   : > { %2151 = vmatpush3.bf16.msra.mxu1 %v2150_v56 }
 0x678   : > { %1563 = vrot.lane.b32.xlu0 %v1556_v26, %s2346_s17  ;;  %1559 = vrot.lane.b32.xlu1 %v1555_v27, %s2347_s29 }
 0x679   : > { %2152 = vmatprep.subr.bf16.mxu1 %v2336_v0 }
 0x67b   : > { %2154 = vmatpush3.bf16.msra.mxu1 %v2153_v59 }
 0x67c   : > { %1567 = vrot.lane.b32.xlu1 %v1557_v29, %s2348_s19  ;;  %2155 = vmatprep.subr.bf16.mxu1 %v2336_v0  ;;  %s1993_s19 = sshll.u32 %s2406_s25, 7  ;;  %s2349_s25 = smov [#allocation5]  }
 0x67d   : > { %s2678_s7 = scalar_lea.hbm %s2729_s6, %s1993_s19  ;;  %s2271_s28 = sshll.u32 %s2349_s25, 4  ;;  %s2272_s28 = int_to_ptr.vmem [resolvable:$false] %s2271_s28 }
 0x67e   : > { %s2273_s11 = scalar_lea.vmem %s2272_s28, 256  ;;  %p2274_p7 = scmp.lt.s32.totalorder %s2680_s18, %s2272_s28 }
 0x67f   : > { %p2275_p10 = scmp.lt.s32.totalorder %s2273_s11, %s2267_s13 }
 0x681   : > { %p2276_p2 = por %p2275_p10, %p2274_p7 }
 0x683   : > { %p2277_p4 = pnand %p2276_p2, %p2270_p13 }
 0x6ea   : > { %v1560_v30 = vpop.permute.xlu1 %1559  ;;  %v1564_v31 = vpop.permute.xlu0 %1563 }
 0x6eb   : > { %v1570_v32 = vsel %vm505_vm2, %v1554_v28, %v1560_v30  ;;  %v1990_v30 = vld [vmem:[%s2728_s5 + $0x4] ss:$0 sm:$0xff] }
 0x6ec   : > { %v1572_v34 = vsel %vm1571_vm3, %v1570_v32, %v1564_v31  ;;  %v1991_v32 = vld [vmem:[%s2728_s5 + $0x5] ss:$0 sm:$0xff] }
 0x6ee   : > { %v1568_v33 = vpop.permute.xlu1 %1567 }
 0x6ef   : > { %v1574_v35 = vsel %vm1573_vm4, %v1572_v34, %v1568_v33 }
 0x6f0   : > { %2096 = vmatmul.mubr.msk.f32.vlgmr.msra.gmra.mrb[8].mxu0 %vm284_vm1, %v1574_v35 }
 0x6f1   : > { %2106 = vmatprep.mubr.msk.f32.mxu0 %vm2337_vm0, %v2338_v1  ;;  %v1681_v1 = vld [vmem:[%s2726_s3] sm:$0xff] }
 0x6f2   : > { %v2141_v48 = vpack.c.bf16 %v1682_v47, %v1681_v1 }
 0x6f4   : > { %2142 = vmatpush3.bf16.msra.mxu0 %v2141_v48 }
 0x6f5   : > { %2143 = vmatprep.subr.bf16.mxu0 %v2336_v0  ;;  %v1769_v0 = vld [vmem:[%s2727_s4 + $0x30] sm:$0xff] }
 0x6f6   : > { %v2156_v9 = vpack.c.bf16 %v1770_v7, %v1769_v0 }
 0x6f8   : > { %2157 = vmatpush3.bf16.msra.mxu1 %v2156_v9 }
 0x7c3   : > { %v1652_v37 = vpop.f32.mrb[8].mxu0 }
 0x7c4   : > { %v1653_v38 = vadd.f32 %v1982_v36, %v1652_v37  ;;  %v2097_v39 = vpop.f32.mrb[9].mxu0 }
 0x7c6   : > { %v1656_v40 = vadd.f32 %v1653_v38, %v2519_v8  ;;  %v1683_v8 = vld [vmem:[%s2726_s3 + $0x10] sm:$0xff] }
 0x7c7   : > { %v2144_v50 = vpack.c.bf16 %v1684_v49, %v1683_v8 }
 0x7c8   : > { %v1657_v41 = vsel %vm284_vm1, %v1656_v40, 0.0 }
 0x7c9   : > { %1658 = vadd.xlane.f32.xlu1 %v1657_v41  ;;  %2145 = vmatpush3.bf16.msra.mxu0 %v2144_v50 }
 0x856   : > { %v1659_v42 = vpop.xlane.xlu1 %1658 }
 0x857   : > { %v1661_v43 = vmul.f32 0.03125, %v1659_v42 }
 0x859   : > { %v1662_v44 = vsub.f32 %v1656_v40, %v1661_v43 }
 0x85b   : > { %v1663_v45 = vmul.f32 %v1662_v44, %v1662_v44 }
 0x85d   : > { %v1664_v46 = vsel %vm284_vm1, %v1663_v45, 0.0 }
 0x85e   : > { %1665 = vadd.xlane.f32.xlu0 %v1664_v46 }
 0x8eb   : > { %v1666_v60 = vpop.xlane.xlu0 %1665 }
 0x8ec   : > { %v1667_v61 = vmul.f32 0.03125, %v1666_v60 }
 0x8ee   : > { %v1668_v62 = vadd.f32 1e-05, %v1667_v61 }
 0x8f0   : > { %2233 = vrsqrt.f32 %v1668_v62 }
 0x8fa   : > { %v2234_v63 = vpop.eup %2233 }
 0x8fb   : > { %v1670_v3 = vmul.f32 %v2234_v63, %v1662_v44 }
 0x8fd   : > { %v1675_v5 = vmul.f32 %v1984_v2, %v1670_v3 }
 0x8ff   : > { %v1680_v6 = vadd.f32 %v1985_v4, %v1675_v5 }
 0x901   : > { %2107 = vmatmul.mubr.msk.f32.vlgmr.msra.gmra.mrb[10].mxu0 %vm284_vm1, %v1680_v6 }
 0x9d4   : > { %v1758_v11 = vpop.f32.mrb[10].mxu0 }
 0x9d5   : > { %v1759_v12 = vadd.f32 %v1986_v10, %v1758_v11  ;;  %v2108_v13 = vpop.f32.mrb[11].mxu0 }
 0x9d7   : > { %v1762_v14 = vmax.f32 %v1759_v12, 0.0 }
 0x9d9   : > { %2126 = vmatmul.mubr.msk.f32.vlgmr.msra.gmra.mrb[10].mxu1 %vm1775_vm5, %v1762_v14 }
 0xaac   : > { %v1845_v16 = vpop.f32.mrb[10].mxu1 }
 0xaad   : > { %v1846_v17 = vadd.f32 %v1988_v15, %v1845_v16  ;;  %v2127_v18 = vpop.f32.mrb[11].mxu1 }
 0xaaf   : > { %v1849_v19 = vadd.f32 %v1846_v17, %v1680_v6 }
 0xab1   : > { %v1850_v20 = vsel %vm284_vm1, %v1849_v19, 0.0 }
 0xab2   : > { %1851 = vadd.xlane.f32.xlu1 %v1850_v20 }
 0xb3f   : > { %v1852_v21 = vpop.xlane.xlu1 %1851 }
 0xb40   : > { %v1853_v22 = vmul.f32 0.03125, %v1852_v21 }
 0xb42   : > { %v1854_v23 = vsub.f32 %v1849_v19, %v1853_v22 }
 0xb44   : > { %v1855_v24 = vmul.f32 %v1854_v23, %v1854_v23 }
 0xb46   : > { %v1856_v25 = vsel %vm284_vm1, %v1855_v24, 0.0 }
 0xb47   : > { %1857 = vadd.xlane.f32.xlu0 %v1856_v25 }
 0xbd4   : > { %v1858_v26 = vpop.xlane.xlu0 %1857 }
 0xbd5   : > { %v1859_v27 = vmul.f32 0.03125, %v1858_v26 }
 0xbd7   : > { %v1860_v28 = vadd.f32 1e-05, %v1859_v27 }
 0xbd9   : > { %2235 = vrsqrt.f32 %v1860_v28 }
 0xbe3   : > { %v2236_v29 = vpop.eup %2235 }
 0xbe4   : > { %v1862_v31 = vmul.f32 %v2236_v29, %v1854_v23 }
 0xbe6   : > { %v1867_v33 = vmul.f32 %v1990_v30, %v1862_v31 }
 0xbe8   : > { %v1872_v34 = vadd.f32 %v1991_v32, %v1867_v33 }
 0xbea   : > { %1873 = vst.msk [vmem:[%s266_s16] sm:$0xff] %vm284_vm1, %v1872_v34 }
 0xbeb   : > { %2280 = shalt.err (!%p2277_p4)
}
 0xbec   : > { %s2281_s26 = scalar_lea.hbm %s2678_s7, 128  ;;  %s2285_s17 = scalar_lea.hbm %s2729_s6, 256 }
 0xbed   : > { %p2282_p5 = scmp.ne.s32.totalorder %s2678_s7, %s2281_s26  ;;  %p2286_p0 = scmp.lt.u32.totalorder %s2678_s7, %s2729_s6 }
 0xbee   : > { %p2287_p1 = scmp.lt.u32.totalorder %s2285_s17, %s2281_s26  ;;  %p2289_p6 = scmp.lt.u32.totalorder %s2281_s26, %s2678_s7 }
 0xbef   : > { %p2283_p8 = pnand %p2282_p5, %p2738_p11 }
 0xbf0   : > { %p2288_p3 = por %p2287_p1, %p2286_p0 }
 0xbf1   : > { %p2284_p9 = pneg %p2283_p8 }
 0xbf2   : > { %p2290_p12 = por %p2289_p6, %p2288_p3 }
 0xbf4   : > { %p2291_p13 = pnand %p2290_p12, %p2284_p9 }
 0xbf6   : > { %2294 = shalt.err (!%p2291_p13)
}
 0xbf7   : > { %2160 = dma.vmem_to_hbm [thread:$0]  (%p2738_p11), %s2680_s18, 128, %s2678_s7, %s1875_s12  }
 0xbf8 PF: > { %s1900_s16 = sand.u32 1, %s2321_s21   ;;  %p2739_p7 = scmp.ne.s32.totalorder %s2734_s10, 0 }
 0xbf9   : > { %p2740_p10 = scmp.ge.s32.totalorder %s2333_s24, 2  ;;  %s1901_s20 = scalar_lea.sflag [#allocation4], %s1900_s16 }
 0xbfb   : > { %p2167_p2 = pnand %p2740_p10, %p2739_p7 }
 0xbfd   : > { %2316 = dma.done.wait (!%p2167_p2), %s1901_s20, 128  }
 0xbfe   : > { %2318 = vsyncadd (!%p2167_p2), %s1901_s20, 4294967168  ;;  %p19_p4 = scmp.ge.s32.totalorder %s2410_s27, 4   ;;  %s2741_s21 = smov %s2325_s22 }
 0xbff   : > { %s2742_s22 = smov %s2329_s23  ;;  %s2743_s23 = smov %s2422_s30 }
 0xc00   : > { %s2744_s24 = smov %s2410_s27  ;;  %21 = sbr.rel (!%p19_p4) target bundleno = 5 (0x5), region = 89 }
 0xc07   :  { %1906 = vsyncpa [#allocation3], 1 }
 0xc08   :  { %1908 = vsyncpa [#allocation3 + $0x1], 1 }
 0xc09   :  { %1909 = vsyncpa [#allocation4], 1 }
 0xc0a   :  { %1911 = vsyncpa [#allocation4 + $0x1], 1 }

</bundles_post_ra>
